<compile_context>
chip_gen: v7x
topology: tpu7x:2x2x1
jax: 0.10.0
libtpu: 0.0.40
codegen_flags: <defaults>
</compile_context>

<pallas_src>
import functools

import jax
import jax.numpy as jnp
from jax.experimental import pallas as pl
from jax.experimental.pallas import tpu as pltpu

_DROPOUT_P = 0.1
_LANE = 128


def _round_up(n, m):
    return ((n + m - 1) // m) * m


def _dqn_kernel(x_ref, w1_ref, b1_ref, w2_ref, b2_ref, w3_ref, b3_ref,
                *rest, training):
    """One batch tile of the fused 3-layer MLP.

    x_ref:          (TB, n_obs)      bf16
    wK_ref:         (in, out)        bf16 (resident across the grid)
    bK_ref:         (1, out)         f32
    m1_ref, m2_ref: (TB, 128/256)    f32 pre-scaled keep masks (training only)
    out_ref:        (TB, n_act_pad)  f32
    """
    if training:
        m1_ref, m2_ref, out_ref = rest
    else:
        (out_ref,) = rest

    # layer1: bf16 matmul, f32 accumulate; ReLU (+ pre-scaled dropout mask)
    h = jnp.dot(x_ref[...], w1_ref[...], preferred_element_type=jnp.float32)
    h = jnp.maximum(h + b1_ref[...], 0.0)
    if training:
        h = h * m1_ref[...]

    # layer2
    h = jnp.dot(h.astype(jnp.bfloat16), w2_ref[...],
                preferred_element_type=jnp.float32)
    h = jnp.maximum(h + b2_ref[...], 0.0)
    if training:
        h = h * m2_ref[...]

    # layer3 (no activation); lane-padded output keeps the store lane-dense.
    out = jnp.dot(h.astype(jnp.bfloat16), w3_ref[...],
                  preferred_element_type=jnp.float32)
    out_ref[...] = (out + b3_ref[...]).astype(out_ref.dtype)


def dqn_forward(x, params, *, training=False, dropout_key=None,
                dropout_p=_DROPOUT_P):
    """Fused DQN forward.  x: (B, n_observations) float32."""
    w1, b1, w2, b2, w3, b3 = params
    B, n_obs = x.shape
    h1 = w1.shape[1]            # 128
    h2 = w2.shape[1]            # 256
    n_actions = w3.shape[1]
    n_act_pad = _round_up(n_actions, _LANE)

    # --- batch tiling -------------------------------------------------------
    # 256-row tiles fill the v6e/v7x MXU; small batches fall back to one tile.
    TB = min(256, _round_up(B, 8))
    B_pad = _round_up(B, TB)
    grid = (B_pad // TB,)

    # --- host-side prep (once per call) -------------------------------------
    x_pad = x
    if B_pad != B:
        x_pad = jnp.pad(x, ((0, B_pad - B), (0, 0)))
    x_bf16 = x_pad.astype(jnp.bfloat16)

    w1b = w1.astype(jnp.bfloat16)
    w2b = w2.astype(jnp.bfloat16)
    w3p = jnp.pad(w3, ((0, 0), (0, n_act_pad - n_actions))).astype(jnp.bfloat16)
    b3p = jnp.pad(b3, ((0, 0), (0, n_act_pad - n_actions)))

    # resident (constant index) specs for weights/biases
    const = lambda shape: pl.BlockSpec(shape, lambda i: (0, 0))
    # batch-tiled specs for x / masks / output
    tiled = lambda cols: pl.BlockSpec((TB, cols), lambda i: (i, 0))

    args = [x_bf16, w1b, b1, w2b, b2, w3p, b3p]
    in_specs = [
        tiled(n_obs),
        const(w1b.shape), const(b1.shape),
        const(w2b.shape), const(b2.shape),
        const(w3p.shape), const(b3p.shape),
    ]

    if training:
        if dropout_key is None:
            dropout_key = jax.random.PRNGKey(0)
        k1, k2 = jax.random.split(dropout_key)
        inv_keep = 1.0 / (1.0 - dropout_p)
        # keep masks, pre-scaled by 1/(1-p): kernel does a single vmul/layer.
        m1 = jax.random.bernoulli(k1, 1.0 - dropout_p, (B_pad, h1)) \
            .astype(jnp.float32) * inv_keep
        m2 = jax.random.bernoulli(k2, 1.0 - dropout_p, (B_pad, h2)) \
            .astype(jnp.float32) * inv_keep
        args += [m1, m2]
        in_specs += [tiled(h1), tiled(h2)]

    kernel = functools.partial(_dqn_kernel, training=training)

    out_pad = pl.pallas_call(
        kernel,
        out_shape=jax.ShapeDtypeStruct((B_pad, n_act_pad), jnp.float32),
        grid=grid,
        in_specs=in_specs,
        out_specs=tiled(n_act_pad),
        compiler_params=pltpu.CompilerParams(
            dimension_semantics=("parallel",)),
    )(*args)

    return out_pad[:B, :n_actions]


def init_dqn_params(key, n_observations, n_actions):
    """PyTorch nn.Linear default init (U(-1/sqrt(fan_in), 1/sqrt(fan_in))).

    Weights stored pre-transposed as (in_features, out_features) so the kernel
    computes x @ W + b directly on the MXU.
    """
    def linear(k, fan_in, fan_out):
        kw, kb = jax.random.split(k)
        bound = 1.0 / jnp.sqrt(jnp.float32(fan_in))
        w = jax.random.uniform(kw, (fan_in, fan_out), jnp.float32, -bound, bound)
        b = jax.random.uniform(kb, (1, fan_out), jnp.float32, -bound, bound)
        return w, b

    k1, k2, k3 = jax.random.split(key, 3)
    w1, b1 = linear(k1, n_observations, 128)
    w2, b2 = linear(k2, 128, 256)
    w3, b3 = linear(k3, 256, n_actions)
    return (w1, b1, w2, b2, w3, b3)


def _ref_forward(x, params):
    """Pure-JAX reference mirroring the kernel's bf16-matmul / f32-accumulate math."""
    w1, b1, w2, b2, w3, b3 = params
    h = jnp.dot(x.astype(jnp.bfloat16), w1.astype(jnp.bfloat16),
                preferred_element_type=jnp.float32) + b1
    h = jnp.maximum(h, 0.0)
    h = jnp.dot(h.astype(jnp.bfloat16), w2.astype(jnp.bfloat16),
                preferred_element_type=jnp.float32) + b2
    h = jnp.maximum(h, 0.0)
    return jnp.dot(h.astype(jnp.bfloat16), w3.astype(jnp.bfloat16),
                   preferred_element_type=jnp.float32) + b3


if __name__ == "__main__":
    key = jax.random.PRNGKey(0)
    kp, kx, kd = jax.random.split(key, 3)

    batch = 8
    n_observations = 32
    n_actions = 8

    params = init_dqn_params(kp, n_observations, n_actions)
    x = jax.random.normal(kx, (batch, n_observations), dtype=jnp.float32)

    # Eval mode (dropout = identity): check against a matching pure-JAX reference.
    out_eval = dqn_forward(x, params, training=False)
    jax.block_until_ready(out_eval)
    ref = _ref_forward(x, params)
    assert out_eval.shape == (batch, n_actions)
    assert jnp.allclose(out_eval, ref, atol=1e-2, rtol=1e-2), (
        float(jnp.max(jnp.abs(out_eval - ref))))

    # Training mode (dropout active, mask derived from an explicit key).
    out_train = dqn_forward(x, params, training=True, dropout_key=kd)
    jax.block_until_ready(out_train)
    assert out_train.shape == (batch, n_actions)
    assert bool(jnp.all(jnp.isfinite(out_train)))

    print("KERNEL_OK")
</pallas_src>

<mosaic_0001>
module attributes {stable_mosaic.version = 11 : i64} {
  func.func @_dqn_kernel(%arg0: i32, %arg1: memref<8x32xbf16, #tpu.memory_space<vmem>>, %arg2: memref<32x128xbf16, #tpu.memory_space<vmem>>, %arg3: memref<1x128xf32, #tpu.memory_space<vmem>>, %arg4: memref<128x256xbf16, #tpu.memory_space<vmem>>, %arg5: memref<1x256xf32, #tpu.memory_space<vmem>>, %arg6: memref<256x128xbf16, #tpu.memory_space<vmem>>, %arg7: memref<1x128xf32, #tpu.memory_space<vmem>>, %arg8: memref<8x128xf32, #tpu.memory_space<vmem>>) attributes {dimension_semantics = [#tpu.dimension_semantics<parallel>], iteration_bounds = array<i64: 1>, scalar_prefetch = 0 : i64, scratch_operands = 0 : i64, tpu.core_type = #tpu.core_type<tc>, window_params = [{transform_indices = @transform_0, window_bounds = array<i64: 8, 32>}, {pipeline_mode = #tpu.pipeline_mode<synchronous>, transform_indices = @transform_1, window_bounds = array<i64: 32, 128>}, {pipeline_mode = #tpu.pipeline_mode<synchronous>, transform_indices = @transform_2, window_bounds = array<i64: 1, 128>}, {pipeline_mode = #tpu.pipeline_mode<synchronous>, transform_indices = @transform_3, window_bounds = array<i64: 128, 256>}, {pipeline_mode = #tpu.pipeline_mode<synchronous>, transform_indices = @transform_4, window_bounds = array<i64: 1, 256>}, {pipeline_mode = #tpu.pipeline_mode<synchronous>, transform_indices = @transform_5, window_bounds = array<i64: 256, 128>}, {pipeline_mode = #tpu.pipeline_mode<synchronous>, transform_indices = @transform_6, window_bounds = array<i64: 1, 128>}, {transform_indices = @transform_7, window_bounds = array<i64: 8, 128>}]} {
    %c0 = arith.constant 0 : index
    %c0_0 = arith.constant 0 : index
    %0 = vector.load %arg1[%c0, %c0_0] : memref<8x32xbf16, #tpu.memory_space<vmem>>, vector<8x32xbf16>
    %c0_1 = arith.constant 0 : index
    %c0_2 = arith.constant 0 : index
    %1 = vector.load %arg2[%c0_1, %c0_2] : memref<32x128xbf16, #tpu.memory_space<vmem>>, vector<32x128xbf16>
    %cst = arith.constant dense<0.000000e+00> : vector<8x128xf32>
    %2 = tpu.matmul %0, %1, %cst {dimension_numbers = #tpu.dot_dimension_numbers<[1], [0], [0], [1], [0, 0, 1, 1], [], []>} : vector<8x32xbf16>, vector<32x128xbf16>, vector<8x128xf32> -> vector<8x128xf32>
    %c0_3 = arith.constant 0 : index
    %c0_4 = arith.constant 0 : index
    %3 = vector.load %arg3[%c0_3, %c0_4] : memref<1x128xf32, #tpu.memory_space<vmem>>, vector<1x128xf32>
    %4 = vector.broadcast %3 : vector<1x128xf32> to vector<8x128xf32>
    %5 = arith.addf %2, %4 : vector<8x128xf32>
    %cst_5 = arith.constant 0.000000e+00 : f32
    %6 = vector.broadcast %cst_5 : f32 to vector<8x128xf32>
    %7 = arith.maximumf %5, %6 : vector<8x128xf32>
    %8 = arith.truncf %7 : vector<8x128xf32> to vector<8x128xbf16>
    %c0_6 = arith.constant 0 : index
    %c0_7 = arith.constant 0 : index
    %9 = vector.load %arg4[%c0_6, %c0_7] : memref<128x256xbf16, #tpu.memory_space<vmem>>, vector<128x256xbf16>
    %cst_8 = arith.constant dense<0.000000e+00> : vector<8x256xf32>
    %10 = tpu.matmul %8, %9, %cst_8 {dimension_numbers = #tpu.dot_dimension_numbers<[1], [0], [0], [1], [0, 0, 1, 1], [], []>} : vector<8x128xbf16>, vector<128x256xbf16>, vector<8x256xf32> -> vector<8x256xf32>
    %c0_9 = arith.constant 0 : index
    %c0_10 = arith.constant 0 : index
    %11 = vector.load %arg5[%c0_9, %c0_10] : memref<1x256xf32, #tpu.memory_space<vmem>>, vector<1x256xf32>
    %12 = vector.broadcast %11 : vector<1x256xf32> to vector<8x256xf32>
    %13 = arith.addf %10, %12 : vector<8x256xf32>
    %cst_11 = arith.constant 0.000000e+00 : f32
    %14 = vector.broadcast %cst_11 : f32 to vector<8x256xf32>
    %15 = arith.maximumf %13, %14 : vector<8x256xf32>
    %16 = arith.truncf %15 : vector<8x256xf32> to vector<8x256xbf16>
    %c0_12 = arith.constant 0 : index
    %c0_13 = arith.constant 0 : index
    %17 = vector.load %arg6[%c0_12, %c0_13] : memref<256x128xbf16, #tpu.memory_space<vmem>>, vector<256x128xbf16>
    %cst_14 = arith.constant dense<0.000000e+00> : vector<8x128xf32>
    %18 = tpu.matmul %16, %17, %cst_14 {dimension_numbers = #tpu.dot_dimension_numbers<[1], [0], [0], [1], [0, 0, 1, 1], [], []>} : vector<8x256xbf16>, vector<256x128xbf16>, vector<8x128xf32> -> vector<8x128xf32>
    %c0_15 = arith.constant 0 : index
    %c0_16 = arith.constant 0 : index
    %19 = vector.load %arg7[%c0_15, %c0_16] : memref<1x128xf32, #tpu.memory_space<vmem>>, vector<1x128xf32>
    %20 = vector.broadcast %19 : vector<1x128xf32> to vector<8x128xf32>
    %21 = arith.addf %18, %20 : vector<8x128xf32>
    %c0_17 = arith.constant 0 : index
    %c0_18 = arith.constant 0 : index
    %22 = vector.load %arg8[%c0_17, %c0_18] : memref<8x128xf32, #tpu.memory_space<vmem>>, vector<8x128xf32>
    tpu.vector_store %arg8[%c0_17, %c0_18], %21 {strides = array<i32>} : memref<8x128xf32, #tpu.memory_space<vmem>>, vector<8x128xf32>,
    return
  }
  func.func @transform_0(%arg0: i32) -> (i32, i32) {
    %c0_i32 = arith.constant 0 : i32
    %c0_i32_0 = arith.constant 0 : i32
    return %arg0, %c0_i32 : i32, i32
  }
  func.func @transform_1(%arg0: i32) -> (i32, i32) {
    %c0_i32 = arith.constant 0 : i32
    %c0_i32_0 = arith.constant 0 : i32
    %c0_i32_1 = arith.constant 0 : i32
    return %c0_i32, %c0_i32_0 : i32, i32
  }
  func.func @transform_2(%arg0: i32) -> (i32, i32) {
    %c0_i32 = arith.constant 0 : i32
    %c0_i32_0 = arith.constant 0 : i32
    %c0_i32_1 = arith.constant 0 : i32
    return %c0_i32, %c0_i32_0 : i32, i32
  }
  func.func @transform_3(%arg0: i32) -> (i32, i32) {
    %c0_i32 = arith.constant 0 : i32
    %c0_i32_0 = arith.constant 0 : i32
    %c0_i32_1 = arith.constant 0 : i32
    return %c0_i32, %c0_i32_0 : i32, i32
  }
  func.func @transform_4(%arg0: i32) -> (i32, i32) {
    %c0_i32 = arith.constant 0 : i32
    %c0_i32_0 = arith.constant 0 : i32
    %c0_i32_1 = arith.constant 0 : i32
    return %c0_i32, %c0_i32_0 : i32, i32
  }
  func.func @transform_5(%arg0: i32) -> (i32, i32) {
    %c0_i32 = arith.constant 0 : i32
    %c0_i32_0 = arith.constant 0 : i32
    %c0_i32_1 = arith.constant 0 : i32
    return %c0_i32, %c0_i32_0 : i32, i32
  }
  func.func @transform_6(%arg0: i32) -> (i32, i32) {
    %c0_i32 = arith.constant 0 : i32
    %c0_i32_0 = arith.constant 0 : i32
    %c0_i32_1 = arith.constant 0 : i32
    return %c0_i32, %c0_i32_0 : i32, i32
  }
  func.func @transform_7(%arg0: i32) -> (i32, i32) {
    %c0_i32 = arith.constant 0 : i32
    %c0_i32_0 = arith.constant 0 : i32
    return %arg0, %c0_i32 : i32, i32
  }
}

</mosaic_0001>

<bundles_post_ra>
// kernel: tpu_custom_call.1
= control target key start
LH: loop header
LB: loop body
LE: loop exit
PB: predicated region body
PF: predicated region fallthrough
CT: control target
= control target key end

     0   :  { %12 = vsyncpa [#allocation3], 0  ;;  %s866_s0 = inlined_call_operand.hbm [shape: bf16[8,32], index: 0, kind: input, shape index: {}]   ;;  %s867_s1 = inlined_call_operand.hbm [shape: bf16[32,128], index: 1, kind: input, shape index: {}]   ;;  %s868_s2 = inlined_call_operand.vmem [shape: f32[1,128], index: 2, kind: input, shape index: {}]   ;;  %s869_s3 = inlined_call_operand.hbm [shape: bf16[128,256], index: 3, kind: input, shape index: {}]   ;;  %s870_s4 = inlined_call_operand.vmem [shape: f32[1,256], index: 4, kind: input, shape index: {}]   ;;  %s871_s5 = inlined_call_operand.hbm [shape: bf16[256,128], index: 5, kind: input, shape index: {}]   ;;  %s872_s6 = inlined_call_operand.vmem [shape: f32[1,128], index: 6, kind: input, shape index: {}]   ;;  %s873_s7 = inlined_call_operand.hbm [shape: f32[8,128], index: 7, kind: output, shape index: {}]  }
   0x1   :  { %13 = vsyncpa [#allocation6], 0 }
   0x2   :  { %14 = vsyncpa [#allocation9], 0 }
   0x3   :  { %15 = vsyncpa [#allocation4], 0  ;;  %s739_s24 = smov [#allocation5]   ;;  %s621_s28 = scalar_lea.hbm %s867_s1, 256 }
   0x4   :  { %s31_s25 = sshll.u32 %s739_s24, 4  ;;  %p622_p0 = scmp.ne.s32.totalorder %s867_s1, %s621_s28  ;;  %s32_s25 = int_to_ptr.vmem [resolvable:$true] %s31_s25 }
   0x5   :  { %p625_p1 = scmp.lt.u32.totalorder %s621_s28, %s867_s1 }
   0x7   :  { %p627_p2 = pnand %p625_p1, %p622_p0 }
   0x9   :  { %630 = shalt.err (!%p627_p2)
}
   0xa   :  { %s631_s10 = scalar_lea.vmem %s32_s25, 256  ;;  %p636_p4 = scmp.lt.s32.totalorder %s32_s25, %s32_s25 }
   0xb   :  { %p632_p3 = scmp.ne.s32.totalorder %s32_s25, %s631_s10  ;;  %p637_p5 = scmp.lt.s32.totalorder %s631_s10, %s631_s10 }
   0xd   :  { %p638_p6 = por %p637_p5, %p636_p4 }
   0xf   :  { %p639_p7 = pnand %p638_p6, %p632_p3 }
  0x11   :  { %642 = shalt.err (!%p639_p7)
}
  0x12   :  { %s740_s11 = smov 64   ;;  %s741_s12 = smov 4  }
  0x13   :  { %37 = dma.hbm_to_vmem [thread:$0]  %s867_s1, 256, %s32_s25, [#allocation6], %s740_s11, %s740_s11, %s741_s12  }
  0x14   :  { %s742_s15 = smov [#allocation2]   ;;  %s743_s17 = smov [#allocation7]  }
  0x15   :  { %s22_s16 = sshll.u32 %s742_s15, 4  ;;  %s45_s18 = sshll.u32 %s743_s17, 4  ;;  %s23_s16 = int_to_ptr.vmem [resolvable:$true] %s22_s16  ;;  %s46_s18 = int_to_ptr.vmem [resolvable:$true] %s45_s18 }
  0x16   :  { %s643_s21 = scalar_lea.hbm %s866_s0, 64 }
  0x17   :  { %p644_p8 = scmp.ne.s32.totalorder %s866_s0, %s643_s21  ;;  %p647_p9 = scmp.lt.u32.totalorder %s643_s21, %s866_s0 }
  0x19   :  { %p649_p10 = pnand %p647_p9, %p644_p8 }
  0x1b   :  { %652 = shalt.err (!%p649_p10)
}
  0x1c   :  { %s653_s1 = scalar_lea.vmem %s23_s16, 64  ;;  %p658_p12 = scmp.lt.s32.totalorder %s23_s16, %s23_s16 }
  0x1d   :  { %p654_p11 = scmp.ne.s32.totalorder %s23_s16, %s653_s1  ;;  %p659_p13 = scmp.lt.s32.totalorder %s653_s1, %s653_s1 }
  0x1f   :  { %p660_p0 = por %p659_p13, %p658_p12 }
  0x21   :  { %p661_p1 = pnand %p660_p0, %p654_p11 }
  0x23   :  { %664 = shalt.err (!%p661_p1)
}
  0x24   :  { %25 = dma.hbm_to_vmem [thread:$0]  %s866_s0, 64, %s23_s16, [#allocation3]  }
  0x25   :  { %s665_s30 = scalar_lea.hbm %s869_s3, 2048 }
  0x26   :  { %p666_p2 = scmp.ne.s32.totalorder %s869_s3, %s665_s30  ;;  %p669_p3 = scmp.lt.u32.totalorder %s665_s30, %s869_s3 }
  0x28   :  { %p671_p4 = pnand %p669_p3, %p666_p2 }
  0x2a   :  { %674 = shalt.err (!%p671_p4)
}
  0x2b   :  { %s675_s14 = scalar_lea.vmem %s46_s18, 2048  ;;  %p680_p6 = scmp.lt.s32.totalorder %s46_s18, %s46_s18 }
  0x2c   :  { %p676_p5 = scmp.ne.s32.totalorder %s46_s18, %s675_s14  ;;  %p681_p7 = scmp.lt.s32.totalorder %s675_s14, %s675_s14 }
  0x2e   :  { %p682_p8 = por %p681_p7, %p680_p6 }
  0x30   :  { %p683_p9 = pnand %p682_p8, %p676_p5 }
  0x32   :  { %686 = shalt.err (!%p683_p9)
}
  0x33   :  { %s744_s0 = smov 128   ;;  %s745_s15 = smov 8  }
  0x34   :  { %51 = dma.hbm_to_vmem [thread:$0]  %s869_s3, 2048, %s46_s18, [#allocation6], %s744_s0, %s744_s0, %s745_s15  }
  0x35   :  { %s746_s19 = smov [#allocation8]   ;;  %s687_s23 = scalar_lea.hbm %s871_s5, 2048 }
  0x36   :  { %s59_s20 = sshll.u32 %s746_s19, 4  ;;  %p688_p10 = scmp.ne.s32.totalorder %s871_s5, %s687_s23  ;;  %s60_s20 = int_to_ptr.vmem [resolvable:$true] %s59_s20 }
  0x37   :  { %p691_p11 = scmp.lt.u32.totalorder %s687_s23, %s871_s5 }
  0x39   :  { %p693_p12 = pnand %p691_p11, %p688_p10 }
  0x3b   :  { %696 = shalt.err (!%p693_p12)
}
  0x3c   :  { %s697_s27 = scalar_lea.vmem %s60_s20, 2048  ;;  %p702_p0 = scmp.lt.s32.totalorder %s60_s20, %s60_s20 }
  0x3d   :  { %p698_p13 = scmp.ne.s32.totalorder %s60_s20, %s697_s27  ;;  %p703_p1 = scmp.lt.s32.totalorder %s697_s27, %s697_s27 }
  0x3f   :  { %p704_p2 = por %p703_p1, %p702_p0 }
  0x41   :  { %p705_p3 = pnand %p704_p2, %p698_p13 }
  0x43   :  { %708 = shalt.err (!%p705_p3)
}
  0x44   :  { %65 = dma.hbm_to_vmem [thread:$0]  %s871_s5, 2048, %s60_s20, [#allocation9], %s740_s11, %s740_s11, %s741_s12  }
  0x45   :  { %731 = dma.done.wait [#allocation3], 64  }
  0x46   :  { %732 = vsyncadd [#allocation3], 4294967232 }
  0x47   :  { %733 = dma.done.wait [#allocation6], 2304  }
  0x48   :  { %734 = vsyncadd [#allocation6], 4294964992 }
  0x49   :  { %735 = dma.done.wait [#allocation9], 2048  }
  0x4a   :  { %736 = vsyncadd [#allocation9], 4294965248  ;;  %v747_v0 = vmov 0.0   ;;  %vm748_vm0 = vmmov 0   ;;  %v579_v1 = vld [vmem:[#allocation5] sm:$0xff]   ;;  %v580_v2 = vld [vmem:[#allocation5 + $0x8] sm:$0xff]   ;;  %v169_v45 = vlaneseq }
  0x4b   :  { %559 = vmatprep.subr.bf16.mxu0 %v747_v0  ;;  %563 = vmatprep.mubr.msk.bf16.mxu0 %vm748_vm0, %v747_v0  ;;  %v581_v3 = vld [vmem:[#allocation7 + $0x4] ss:$8 sps:$4 sm:$0xff]   ;;  %v583_v4 = vld [vmem:[#allocation7] ss:$8 sps:$4 sm:$0xff]   ;;  %v584_v5 = vld [vmem:[#allocation7 + $0x14] ss:$8 sps:$4 sm:$0xff]  }
  0x4c   :  { %560 = vmatpush3.bf16.msra.mxu0 %v579_v1  ;;  %v81_v6 = vld [vmem:[#allocation2] sm:$0xf]  ;;  %259 = vmatprep.subr.bf16.mxu1 %v581_v3  ;;  %vm105_vm1 = vcmask 261120   ;;  %v586_v7 = vld [vmem:[#allocation7 + $0x10] ss:$8 sps:$4 sm:$0xff]   ;;  %v749_v20 = vmov 0  }
  0x4d   :  { %561 = vmatprep.subr.bf16.mxu0 %v747_v0  ;;  %260 = vmatpush1.bf16.msra.mxu1 %v583_v4  ;;  %v587_v8 = vld [vmem:[#allocation7 + $0x24] ss:$8 sps:$4 sm:$0xff]   ;;  %v589_v9 = vld [vmem:[#allocation7 + $0x20] ss:$8 sps:$4 sm:$0xff]   ;;  %v590_v10 = vld [vmem:[#allocation7 + $0x34] ss:$8 sps:$4 sm:$0xff]  }
  0x4e   :  { %261 = vmatprep.subr.bf16.mxu1 %v584_v5  ;;  %v592_v11 = vld [vmem:[#allocation7 + $0x30] ss:$8 sps:$4 sm:$0xff]   ;;  %v593_v12 = vld [vmem:[#allocation7 + $0x44] ss:$8 sps:$4 sm:$0xff]   ;;  %v595_v13 = vld [vmem:[#allocation7 + $0x40] ss:$8 sps:$4 sm:$0xff]   ;;  %291 = vmatprep.mubr.bf16.mxu1 %v749_v20 }
  0x4f   :  { %v596_v14 = vld [vmem:[#allocation7 + $0x54] ss:$8 sps:$4 sm:$0xff]   ;;  %v598_v15 = vld [vmem:[#allocation7 + $0x50] ss:$8 sps:$4 sm:$0xff]   ;;  %v599_v16 = vld [vmem:[#allocation7 + $0x64] ss:$8 sps:$4 sm:$0xff]  }
  0x50   :  { %562 = vmatpush3.bf16.msra.mxu0 %v580_v2  ;;  %v601_v17 = vld [vmem:[#allocation7 + $0x60] ss:$8 sps:$4 sm:$0xff]   ;;  %v602_v18 = vld [vmem:[#allocation7 + $0x74] ss:$8 sps:$4 sm:$0xff]   ;;  %v604_v19 = vld [vmem:[#allocation7 + $0x70] ss:$8 sps:$4 sm:$0xff]  }
  0x51   :  { %262 = vmatpush1.bf16.msra.mxu1 %v586_v7  ;;  %v605_v21 = vld [vmem:[#allocation8 + $0x40] sm:$0xff]   ;;  %v607_v23 = vld [vmem:[#allocation8 + $0x48] sm:$0xff]   ;;  %v609_v25 = vld [vmem:[#allocation8 + $0x50] sm:$0xff]   ;;  %v170_v46 = vshrl.u32 %v169_v45, 7 }
  0x52   :  { %263 = vmatprep.subr.bf16.mxu1 %v587_v8  ;;  %v606_v22 = vld [vmem:[#allocation8] sm:$0xff]   ;;  %537 = vmatprep.subr.bf16.mxu0 %v605_v21  ;;  %v608_v24 = vld [vmem:[#allocation8 + $0x8] sm:$0xff]   ;;  %v610_v26 = vld [vmem:[#allocation8 + $0x10] sm:$0xff]  }
  0x53   :  { %564 = vmatmul.mubr.msk.bf16.vlgmr.msra.gmra.mrb[0].mxu0 %vm105_vm1, %v81_v6  ;;  %v611_v27 = vld [vmem:[#allocation8 + $0x58] sm:$0xff]   ;;  %v613_v29 = vld [vmem:[#allocation8 + $0x60] sm:$0xff]   ;;  %v615_v31 = vld [vmem:[#allocation8 + $0x68] sm:$0xff]   ;;  %v171_v47 = vsub.s32 0, %v170_v46  ;;  %v175_v49 = vsub.s32 1, %v170_v46 }
  0x54   :  { %538 = vmatpush3.bf16.msra.mxu0 %v606_v22  ;;  %v612_v28 = vld [vmem:[#allocation8 + $0x18] sm:$0xff]   ;;  %v614_v30 = vld [vmem:[#allocation8 + $0x20] sm:$0xff]   ;;  %v616_v32 = vld [vmem:[#allocation8 + $0x28] sm:$0xff]  }
  0x55   :  { %264 = vmatpush1.bf16.msra.mxu1 %v589_v9  ;;  %539 = vmatprep.subr.bf16.mxu0 %v607_v23  ;;  %v497_v33 = vld [vmem:[%s868_s2] ss:$0 sm:$0xff]  ;;  %v617_v41 = vld [vmem:[#allocation8 + $0x70] sm:$0xff]   ;;  %v619_v43 = vld [vmem:[#allocation8 + $0x78] sm:$0xff]  }
  0x56   :  { %265 = vmatprep.subr.bf16.mxu1 %v590_v10  ;;  %v618_v42 = vld [vmem:[#allocation8 + $0x30] sm:$0xff]   ;;  %v620_v44 = vld [vmem:[#allocation8 + $0x38] sm:$0xff]   ;;  %v167_v48 = vld [vmem:[%s870_s4] sm:$0x3]  ;;  %s750_s4 = smov [#allocation10]  }
  0x57   :  { %v172_v50 = vrot.slane %v167_v48, %v171_v47  ;;  %v176_v51 = vrot.slane %v167_v48, %v175_v49  ;;  %v517_v63 = vld [vmem:[%s872_s6] ss:$0 sm:$0xff]  ;;  %s486_s30 = sshll.u32 %s750_s4, 4  ;;  %s487_s30 = int_to_ptr.vmem [resolvable:$true] %s486_s30 }
  0x58   :  { %540 = vmatpush3.bf16.msra.mxu0 %v608_v24  ;;  %s709_s8 = scalar_lea.vmem %s487_s30, 128  ;;  %p714_p5 = scmp.lt.s32.totalorder %s487_s30, %s487_s30 }
  0x59   :  { %266 = vmatpush1.bf16.msra.mxu1 %v592_v11  ;;  %541 = vmatprep.subr.bf16.mxu0 %v609_v25  ;;  %p710_p4 = scmp.ne.s32.totalorder %s487_s30, %s709_s8  ;;  %p715_p6 = scmp.lt.s32.totalorder %s709_s8, %s709_s8 }
  0x5a   :  { %267 = vmatprep.subr.bf16.mxu1 %v593_v12 }
  0x5b   :  { %p716_p7 = por %p715_p6, %p714_p5 }
  0x5c   :  { %542 = vmatpush3.bf16.msra.mxu0 %v610_v26 }
  0x5d   :  { %268 = vmatpush1.bf16.msra.mxu1 %v595_v13  ;;  %543 = vmatprep.subr.bf16.mxu0 %v611_v27  ;;  %p717_p8 = pnand %p716_p7, %p710_p4 }
  0x5e   :  { %269 = vmatprep.subr.bf16.mxu1 %v596_v14 }
  0x60   :  { %544 = vmatpush3.bf16.msra.mxu0 %v612_v28 }
  0x61   :  { %270 = vmatpush1.bf16.msra.mxu1 %v598_v15  ;;  %545 = vmatprep.subr.bf16.mxu0 %v613_v29 }
  0x62   :  { %271 = vmatprep.subr.bf16.mxu1 %v599_v16 }
  0x64   :  { %546 = vmatpush3.bf16.msra.mxu0 %v614_v30 }
  0x65   :  { %272 = vmatpush1.bf16.msra.mxu1 %v601_v17  ;;  %547 = vmatprep.subr.bf16.mxu0 %v615_v31 }
  0x66   :  { %273 = vmatprep.subr.bf16.mxu1 %v602_v18 }
  0x68   :  { %548 = vmatpush3.bf16.msra.mxu0 %v616_v32 }
  0x69   :  { %274 = vmatpush1.bf16.msra.mxu1 %v604_v19  ;;  %549 = vmatprep.subr.bf16.mxu0 %v617_v41 }
  0x6c   :  { %550 = vmatpush3.bf16.msra.mxu0 %v618_v42 }
  0x6d   :  { %551 = vmatprep.subr.bf16.mxu0 %v619_v43 }
  0x70   :  { %552 = vmatpush3.bf16.msra.mxu0 %v620_v44 }
 0x126   :  { %v143_v34 = vpop.f32.mrb[0].mxu0 }
 0x127   :  { %v144_v35 = vadd.f32 %v497_v33, %v143_v34  ;;  %v565_v36 = vpop.f32.mrb[1].mxu0 }
 0x128   :  { %v146_v37 = vpop.f32.mrb[2].mxu0 }
 0x129   :  { %v149_v38 = vmax.f32 %v144_v35, 0.0  ;;  %v566_v39 = vpop.f32.mrb[3].mxu0 }
 0x12b   :  { %v150_v40 = vpack.c.bf16 %v149_v38, %v149_v38 }
 0x12d   :  { %292 = vmatmul.mubr.bf16.vlgmr.msra.gmra.mrb[0].mxu1 %v150_v40 }
 0x200   :  { %v293_v52 = vpop.f32.mrb[0].mxu1 }
 0x201   :  { %v294_v53 = vadd.f32 %v293_v52, %v172_v50  ;;  %v295_v54 = vpop.f32.mrb[1].mxu1 }
 0x202   :  { %v296_v55 = vadd.f32 %v295_v54, %v176_v51  ;;  %v297_v56 = vpop.f32.mrb[2].mxu1 }
 0x203   :  { %v300_v57 = vmax.f32 %v294_v53, 0.0  ;;  %v298_v58 = vpop.f32.mrb[3].mxu1 }
 0x204   :  { %v301_v59 = vmax.f32 %v296_v55, 0.0 }
 0x205   :  { %v302_v61 = vpack.c.bf16 %v300_v57, %v300_v57 }
 0x206   :  { %v303_v60 = vpack.c.bf16 %v301_v59, %v301_v59 }
 0x208   :  { %471 = vmatprep.mubr.bf16.mxu0 %v303_v60 }
 0x209   :  { %472 = vmatmul.mubr.bf16.vlgmr.msra.gmra.mrb[4].mxu0 %v302_v61 }
 0x2dc   :  { %v553_v62 = vpop.f32.mrb[4].mxu0 }
 0x2dd   :  { %v554_v0 = vpop.f32.mrb[5].mxu0 }
 0x2de   :  { %v555_v1 = vadd.f32 %v554_v0, %v553_v62  ;;  %v556_v2 = vpop.f32.mrb[6].mxu0 }
 0x2df   :  { %v557_v3 = vpop.f32.mrb[7].mxu0 }
 0x2e0   :  { %v474_v4 = vadd.f32 %v555_v1, %v517_v63 }
 0x2e2   :  { %479 = vst [vmem:[#allocation10] sm:$0xff] %v474_v4 }
 0x2e3   :  { %720 = shalt.err (!%p717_p8)
}
 0x2e4   :  { %s721_s6 = scalar_lea.hbm %s873_s7, 128 }
 0x2e5   :  { %p722_p9 = scmp.ne.s32.totalorder %s873_s7, %s721_s6  ;;  %p725_p10 = scmp.lt.u32.totalorder %s721_s6, %s873_s7 }
 0x2e7   :  { %p727_p11 = pnand %p725_p10, %p722_p9 }
 0x2e9   :  { %730 = shalt.err (!%p727_p11)
}
 0x2ea   :  { %489 = dma.vmem_to_hbm [thread:$0]  %s487_s30, 128, %s873_s7, [#allocation4]  }
 0x2eb   :  { %737 = dma.done.wait [#allocation4], 128  }
 0x2ec   :  { %738 = vsyncadd [#allocation4], 4294967168 }
 0x2ed   :  { %493 = vsyncpa [#allocation3], 1 }
 0x2ee   :  { %494 = vsyncpa [#allocation6], 1 }
 0x2ef   :  { %495 = vsyncpa [#allocation9], 1 }
 0x2f0   :  { %496 = vsyncpa [#allocation4], 1 }

</bundles_post_ra>
